<compile_context>
chip_gen: v7x
topology: tpu7x:2x2x1
jax: 0.10.0
libtpu: 0.0.40
codegen_flags: <defaults>
</compile_context>

<pallas_src>
import functools

import jax
import jax.numpy as jnp
from jax import lax
from jax.experimental import pallas as pl
from jax.experimental.pallas import tpu as pltpu

_LANE = 128
_TM_CAP = 512
_TN_CAP = 512
_TK_CAP = 1024


def _cdiv(a, b):
    return -(-a // b)


def _round_up(a, b):
    return _cdiv(a, b) * b


def _sublane_pack(dtype):
    # 8 for f32, 16 for bf16, 32 for int8/fp8: one packed sublane group.
    return max(8, 32 // jnp.dtype(dtype).itemsize)


def _balanced_tile(dim, cap, align):
    """Tile <= cap, aligned to `align`, with near-minimal padding waste."""
    if dim <= align:
        return dim                      # single block covering the full dim
    if dim <= cap:
        return _round_up(dim, align)
    n_tiles = _cdiv(dim, cap)           # balanced: waste at most one `align`
    return _round_up(_cdiv(dim, n_tiles), align)


def _lane_tile(dim, cap):
    """Lane-dim tile: 128-aligned, bumped to a 256-multiple (v6e/v7x MXU
    width) only when that adds <= 12.5% padded work."""
    t = _balanced_tile(dim, cap, _LANE)
    if t < _LANE:                       # dim < 128: exact full-dim block
        return t
    t256 = _round_up(t, 256)
    if _cdiv(dim, t256) * t256 <= (_cdiv(dim, t) * t * 9) // 8:
        t = t256
    return t


# ---------------------------------------------------------------------------
# Kernels
# ---------------------------------------------------------------------------
def _matmul_acc_kernel(x_ref, w_ref, b_ref, o_ref, acc_ref, *,
                       K, tk, compute_dtype):
    """grid = (M tiles, N tiles, K tiles); K (last axis) is the reduction."""
    k = pl.program_id(2)

    @pl.when(k == 0)
    def _init():
        acc_ref[...] = jnp.zeros_like(acc_ref)

    x = x_ref[...]
    if K % tk != 0:
        # The last K block overruns the (unpadded) x array; the tail columns
        # of the VMEM tile are undefined, so zero them before they can reach
        # the accumulator (garbage may be NaN, and 0 * NaN = NaN).
        col = lax.broadcasted_iota(jnp.int32, x.shape, 1)
        x = jnp.where(col + k * tk < K, x, jnp.zeros_like(x))

    acc_ref[...] += jnp.dot(x.astype(compute_dtype), w_ref[...],
                            preferred_element_type=jnp.float32)

    @pl.when(k == pl.num_programs(2) - 1)
    def _finalize():
        o_ref[...] = (acc_ref[...] + b_ref[...]).astype(o_ref.dtype)


def _matmul_1k_kernel(x_ref, w_ref, b_ref, o_ref, *, K, tk, compute_dtype):
    """Fast path: whole K fits one tile -> no reduction axis, no scratch."""
    x = x_ref[...]
    if K % tk != 0:
        col = lax.broadcasted_iota(jnp.int32, x.shape, 1)
        x = jnp.where(col < K, x, jnp.zeros_like(x))
    acc = jnp.dot(x.astype(compute_dtype), w_ref[...],
                  preferred_element_type=jnp.float32)
    o_ref[...] = (acc + b_ref[...]).astype(o_ref.dtype)


# ---------------------------------------------------------------------------
# Parameter-init-time prep + per-call forward
# ---------------------------------------------------------------------------
def make_linear_disentangle(weight, bias=None, *, compute_dtype=jnp.bfloat16):
    """One-time parameter prep + jitted forward for y = x @ W + b.

    weight: [in_channels, out_channels]; bias: [out_channels] or None.
    W and b are cast / zero-padded exactly once here (parameter-init time),
    so the per-call path streams x and the output through HBM exactly once,
    with no host-side repack.  `compute_dtype` is the MXU operand dtype
    (bf16 by default; the accumulator and bias epilogue stay f32).
    """
    K, N = weight.shape
    compute_dtype = jnp.dtype(compute_dtype)

    tn = _lane_tile(N, _TN_CAP)
    tk = _lane_tile(K, _TK_CAP)
    Kp = _round_up(K, tk)
    Np = _round_up(N, tn)
    nk = Kp // tk
    n_tiles = Np // tn

    # One-time repack: genuinely-zero K/N tails (NaN-safe) + MXU dtype cast.
    wp = jnp.zeros((Kp, Np), compute_dtype).at[:K, :N].set(
        weight.astype(compute_dtype))
    if bias is None:
        bp = jnp.zeros((1, Np), jnp.float32)
    else:
        bp = jnp.zeros((1, Np), jnp.float32).at[0, :N].set(
            bias.astype(jnp.float32))

    # v7x has 2 TensorCores sharded over "parallel" grid axes: make sure the
    # parallel grid has >= 2 blocks there.
    try:
        two_tc = "7" in jax.devices()[0].device_kind
    except Exception:
        two_tc = False

    @jax.jit
    def forward(x, wp, bp):
        if x.shape[-1] != K:
            raise ValueError(f"expected last dim {K}, got {x.shape[-1]}")
        lead = x.shape[:-1]
        x2d = x.reshape(-1, K)
        M = x2d.shape[0]
        out_dtype = x.dtype

        pack = _sublane_pack(x.dtype)
        tm = _balanced_tile(M, _TM_CAP, pack)
        if two_tc and _cdiv(M, tm) * n_tiles < 2 and M > pack:
            tm = max(pack, _round_up(_cdiv(M, 2), pack))   # use both TCs
        m_tiles = _cdiv(M, tm)

        # Honest traffic: x streamed once per N tile, W once per M tile.
        cost = pl.CostEstimate(
            flops=2 * M * K * N,
            transcendentals=0,
            bytes_accessed=(x2d.dtype.itemsize * M * K * n_tiles
                            + wp.dtype.itemsize * Kp * Np * m_tiles
                            + bp.dtype.itemsize * Np * m_tiles * n_tiles
                            + jnp.dtype(out_dtype).itemsize * M * N),
        )
        out_shape = jax.ShapeDtypeStruct((M, N), out_dtype)

        if nk == 1:
            kern = functools.partial(_matmul_1k_kernel, K=K, tk=tk,
                                     compute_dtype=compute_dtype)
            out2d = pl.pallas_call(
                kern,
                out_shape=out_shape,
                grid_spec=pltpu.PrefetchScalarGridSpec(
                    num_scalar_prefetch=0,
                    grid=(m_tiles, n_tiles),
                    in_specs=[
                        pl.BlockSpec((tm, tk), lambda i, j: (i, 0)),   # x
                        pl.BlockSpec((tk, tn), lambda i, j: (0, j)),   # W
                        pl.BlockSpec((1, tn), lambda i, j: (0, j)),    # bias
                    ],
                    out_specs=pl.BlockSpec((tm, tn), lambda i, j: (i, j)),
                ),
                compiler_params=pltpu.CompilerParams(
                    dimension_semantics=("parallel", "parallel")),
                cost_estimate=cost,
            )(x2d, wp, bp)
        else:
            kern = functools.partial(_matmul_acc_kernel, K=K, tk=tk,
                                     compute_dtype=compute_dtype)
            out2d = pl.pallas_call(
                kern,
                out_shape=out_shape,
                grid_spec=pltpu.PrefetchScalarGridSpec(
                    num_scalar_prefetch=0,
                    grid=(m_tiles, n_tiles, nk),
                    in_specs=[
                        pl.BlockSpec((tm, tk), lambda i, j, k: (i, k)),  # x
                        pl.BlockSpec((tk, tn), lambda i, j, k: (k, j)),  # W
                        pl.BlockSpec((1, tn), lambda i, j, k: (0, j)),   # bias
                    ],
                    out_specs=pl.BlockSpec((tm, tn), lambda i, j, k: (i, j)),
                    scratch_shapes=[pltpu.VMEM((tm, tn), jnp.float32)],
                ),
                compiler_params=pltpu.CompilerParams(
                    dimension_semantics=("parallel", "parallel", "arbitrary")),
                cost_estimate=cost,
            )(x2d, wp, bp)

        return out2d.reshape(lead + (N,))

    return lambda x: forward(x, wp, bp)


def glorot_init(key, in_channels, out_channels, dtype=jnp.float32):
    # torch_geometric glorot: U(-stdv, stdv), stdv = sqrt(6/(fan_in+fan_out))
    stdv = (6.0 / (in_channels + out_channels)) ** 0.5
    return jax.random.uniform(key, (in_channels, out_channels), dtype=dtype,
                              minval=-stdv, maxval=stdv)


class LinearDisentangle:
    """JAX/Pallas counterpart of the torch module (glorot weight, zero bias)."""

    def __init__(self, key, in_channels, out_channels,
                 compute_dtype=jnp.bfloat16, param_dtype=jnp.float32):
        self.weight = glorot_init(key, in_channels, out_channels, param_dtype)
        self.bias = jnp.zeros((out_channels,), param_dtype)
        # Parameter-init-time repack (pad + cast) happens exactly once, here.
        self._forward = make_linear_disentangle(
            self.weight, self.bias, compute_dtype=compute_dtype)

    def __call__(self, x):
        return self._forward(x)


if __name__ == "__main__":
    key = jax.random.PRNGKey(0)
    k = jax.random.split(key, 8)

    # --- Test 1: module-style usage (glorot weight, zeros bias) ------------
    in1, out1 = 32, 64
    layer = LinearDisentangle(k[0], in1, out1)          # default bf16 MXU path
    x1 = jax.random.normal(k[1], (2, 8, in1), dtype=jnp.float32)
    y1 = layer(x1)
    jax.block_until_ready(y1)
    ref1 = jnp.dot(x1.astype(jnp.bfloat16), layer.weight.astype(jnp.bfloat16),
                   preferred_element_type=jnp.float32) + layer.bias
    assert y1.shape == (2, 8, out1)
    assert jnp.allclose(y1, ref1, atol=1e-2, rtol=1e-2)

    # --- Test 2: ragged M/K/N -> in-kernel K mask + clipped edge stores ----
    in2, out2 = 200, 260
    x2 = jax.random.normal(k[2], (3, 37, in2), dtype=jnp.float32)
    w2 = glorot_init(k[3], in2, out2)
    b2 = jax.random.normal(k[4], (out2,), dtype=jnp.float32)
    fwd2 = make_linear_disentangle(w2, b2)
    y2 = fwd2(x2)
    jax.block_until_ready(y2)
    ref2 = jnp.dot(x2.astype(jnp.bfloat16), w2.astype(jnp.bfloat16),
                   preferred_element_type=jnp.float32) + b2
    assert y2.shape == (3, 37, out2)
    assert jnp.allclose(y2, ref2, atol=1e-2, rtol=1e-2)
    # Same-semantics sanity check vs the f32 reference (bf16-operand tolerance).
    assert jnp.allclose(y2, x2 @ w2 + b2, atol=7e-2, rtol=7e-2)

    # --- Test 3: K > tile cap -> 3-D accumulator grid with ragged K tail ---
    in3, out3 = 2000, 384
    x3 = jax.random.normal(k[5], (96, in3), dtype=jnp.float32)
    w3 = glorot_init(k[6], in3, out3)
    b3 = jax.random.normal(k[7], (out3,), dtype=jnp.float32)
    fwd3 = make_linear_disentangle(w3, b3)
    y3 = fwd3(x3)
    jax.block_until_ready(y3)
    ref3 = jnp.dot(x3.astype(jnp.bfloat16), w3.astype(jnp.bfloat16),
                   preferred_element_type=jnp.float32) + b3
    assert y3.shape == (96, out3)
    assert jnp.allclose(y3, ref3, atol=2e-2, rtol=2e-2)

    # --- Test 4: full-width f32 operand path (compute_dtype=float32) -------
    fwd3_f32 = make_linear_disentangle(w3, b3, compute_dtype=jnp.float32)
    y3f = fwd3_f32(x3)
    jax.block_until_ready(y3f)
    assert jnp.allclose(y3f, x3 @ w3 + b3, atol=3e-2, rtol=3e-2)

    print("KERNEL_OK")
</pallas_src>

<mosaic_0001>
module attributes {stable_mosaic.version = 11 : i64} {
  func.func @_matmul_1k_kernel(%arg0: i32, %arg1: i32, %arg2: memref<16x32xf32, #tpu.memory_space<vmem>>, %arg3: memref<32x64xbf16, #tpu.memory_space<vmem>>, %arg4: memref<1x64xf32, #tpu.memory_space<vmem>>, %arg5: memref<16x64xf32, #tpu.memory_space<vmem>>) attributes {dimension_semantics = [#tpu.dimension_semantics<parallel>, #tpu.dimension_semantics<parallel>], iteration_bounds = array<i64: 1, 1>, scalar_prefetch = 0 : i64, scratch_operands = 0 : i64, tpu.core_type = #tpu.core_type<tc>, window_params = [{transform_indices = @transform_0, window_bounds = array<i64: 16, 32>}, {transform_indices = @transform_1, window_bounds = array<i64: 32, 64>}, {transform_indices = @transform_2, window_bounds = array<i64: 1, 64>}, {transform_indices = @transform_3, window_bounds = array<i64: 16, 64>}]} {
    %c0 = arith.constant 0 : index
    %c0_0 = arith.constant 0 : index
    %0 = vector.load %arg2[%c0, %c0_0] : memref<16x32xf32, #tpu.memory_space<vmem>>, vector<16x32xf32>
    %1 = arith.truncf %0 : vector<16x32xf32> to vector<16x32xbf16>
    %c0_1 = arith.constant 0 : index
    %c0_2 = arith.constant 0 : index
    %2 = vector.load %arg3[%c0_1, %c0_2] : memref<32x64xbf16, #tpu.memory_space<vmem>>, vector<32x64xbf16>
    %cst = arith.constant dense<0.000000e+00> : vector<16x64xf32>
    %3 = tpu.matmul %1, %2, %cst {dimension_numbers = #tpu.dot_dimension_numbers<[1], [0], [0], [1], [0, 0, 1, 1], [], []>} : vector<16x32xbf16>, vector<32x64xbf16>, vector<16x64xf32> -> vector<16x64xf32>
    %c0_3 = arith.constant 0 : index
    %c0_4 = arith.constant 0 : index
    %4 = vector.load %arg4[%c0_3, %c0_4] : memref<1x64xf32, #tpu.memory_space<vmem>>, vector<1x64xf32>
    %5 = vector.broadcast %4 : vector<1x64xf32> to vector<16x64xf32>
    %6 = arith.addf %3, %5 : vector<16x64xf32>
    %c0_5 = arith.constant 0 : index
    %c0_6 = arith.constant 0 : index
    %7 = vector.load %arg5[%c0_5, %c0_6] : memref<16x64xf32, #tpu.memory_space<vmem>>, vector<16x64xf32>
    tpu.vector_store %arg5[%c0_5, %c0_6], %6 {strides = array<i32>} : memref<16x64xf32, #tpu.memory_space<vmem>>, vector<16x64xf32>,
    return
  }
  func.func @transform_0(%arg0: i32, %arg1: i32) -> (i32, i32) {
    %c0_i32 = arith.constant 0 : i32
    %c0_i32_0 = arith.constant 0 : i32
    return %arg0, %c0_i32 : i32, i32
  }
  func.func @transform_1(%arg0: i32, %arg1: i32) -> (i32, i32) {
    %c0_i32 = arith.constant 0 : i32
    %c0_i32_0 = arith.constant 0 : i32
    return %c0_i32, %arg1 : i32, i32
  }
  func.func @transform_2(%arg0: i32, %arg1: i32) -> (i32, i32) {
    %c0_i32 = arith.constant 0 : i32
    %c0_i32_0 = arith.constant 0 : i32
    return %c0_i32, %arg1 : i32, i32
  }
  func.func @transform_3(%arg0: i32, %arg1: i32) -> (i32, i32) {
    %c0_i32 = arith.constant 0 : i32
    return %arg0, %arg1 : i32, i32
  }
}

</mosaic_0001>

<bundles_post_ra>
// kernel: forward.1
= control target key start
LH: loop header
LB: loop body
LE: loop exit
PB: predicated region body
PF: predicated region fallthrough
CT: control target
= control target key end

     0   :  { %8 = vsyncpa [#allocation3], 0  ;;  %s308_s0 = inlined_call_operand.hbm [shape: f32[16,32], index: 0, kind: input, shape index: {}]   ;;  %s309_s1 = inlined_call_operand.hbm [shape: bf16[32,64], index: 1, kind: input, shape index: {}]   ;;  %s310_s2 = inlined_call_operand.vmem [shape: f32[1,64], index: 2, kind: input, shape index: {}]   ;;  %s311_s3 = inlined_call_operand.hbm [shape: f32[16,64], index: 3, kind: output, shape index: {}]  }
   0x1   :  { %9 = vsyncpa [#allocation6], 0 }
   0x2   :  { %10 = vsyncpa [#allocation4], 0  ;;  %s234_s12 = smov [#allocation2]   ;;  %s162_s16 = scalar_lea.hbm %s308_s0, 256 }
   0x3   :  { %s16_s13 = sshll.u32 %s234_s12, 4  ;;  %p163_p0 = scmp.ne.s32.totalorder %s308_s0, %s162_s16  ;;  %s17_s13 = int_to_ptr.vmem [resolvable:$true] %s16_s13 }
   0x4   :  { %p166_p1 = scmp.lt.u32.totalorder %s162_s16, %s308_s0 }
   0x6   :  { %p168_p2 = pnand %p166_p1, %p163_p0 }
   0x8   :  { %171 = shalt.err (!%p168_p2)
}
   0x9   :  { %s172_s21 = scalar_lea.vmem %s17_s13, 256  ;;  %p177_p4 = scmp.lt.s32.totalorder %s17_s13, %s17_s13 }
   0xa   :  { %p173_p3 = scmp.ne.s32.totalorder %s17_s13, %s172_s21  ;;  %p178_p5 = scmp.lt.s32.totalorder %s172_s21, %s172_s21 }
   0xc   :  { %p179_p6 = por %p178_p5, %p177_p4 }
   0xe   :  { %p180_p7 = pnand %p179_p6, %p173_p3 }
  0x10   :  { %183 = shalt.err (!%p180_p7)
}
  0x11   :  { %s235_s22 = smov 128   ;;  %s236_s23 = smov 8  }
  0x12   :  { %22 = dma.hbm_to_vmem [thread:$0]  %s308_s0, 256, %s17_s13, [#allocation3], %s235_s22, %s235_s22, %s236_s23  }
  0x13   :  { %s237_s26 = smov [#allocation5]   ;;  %s184_s30 = scalar_lea.hbm %s309_s1, 256 }
  0x14   :  { %s28_s27 = sshll.u32 %s237_s26, 4  ;;  %p185_p8 = scmp.ne.s32.totalorder %s309_s1, %s184_s30  ;;  %s29_s27 = int_to_ptr.vmem [resolvable:$true] %s28_s27 }
  0x15   :  { %p188_p9 = scmp.lt.u32.totalorder %s184_s30, %s309_s1 }
  0x17   :  { %p190_p10 = pnand %p188_p9, %p185_p8 }
  0x19   :  { %193 = shalt.err (!%p190_p10)
}
  0x1a   :  { %s194_s8 = scalar_lea.vmem %s29_s27, 256  ;;  %p199_p12 = scmp.lt.s32.totalorder %s29_s27, %s29_s27 }
  0x1b   :  { %p195_p11 = scmp.ne.s32.totalorder %s29_s27, %s194_s8  ;;  %p200_p13 = scmp.lt.s32.totalorder %s194_s8, %s194_s8 }
  0x1d   :  { %p201_p0 = por %p200_p13, %p199_p12 }
  0x1f   :  { %p202_p1 = pnand %p201_p0, %p195_p11 }
  0x21   :  { %205 = shalt.err (!%p202_p1)
}
  0x22   :  { %s238_s0 = smov 64   ;;  %s239_s9 = smov 4  }
  0x23   :  { %34 = dma.hbm_to_vmem [thread:$0]  %s309_s1, 256, %s29_s27, [#allocation6], %s238_s0, %s238_s0, %s239_s9  }
  0x24   :  { %228 = dma.done.wait [#allocation3], 256  }
  0x25   :  { %229 = vsyncadd [#allocation3], 4294967040 }
  0x26   :  { %230 = dma.done.wait [#allocation6], 256  }
  0x27   :  { %231 = vsyncadd [#allocation6], 4294967040  ;;  %v240_v0 = vmov 0.0   ;;  %vm241_vm0 = vmmov 0   ;;  %v160_v1 = vld [vmem:[#allocation5] sm:$0xff]   ;;  %v161_v2 = vld [vmem:[#allocation5 + $0x8] sm:$0xff]  }
  0x28   :  { %143 = vmatprep.subr.bf16.mxu0 %v240_v0  ;;  %147 = vmatprep.mubr.msk.bf16.mxu0 %vm241_vm0, %v240_v0  ;;  %v44_v3 = vld [vmem:[#allocation2] sm:$0xff]  ;;  %v45_v4 = vld [vmem:[#allocation2 + $0x8] sm:$0xff]  ;;  %vm70_vm1 = vcmask 261120   ;;  %vm115_vm2 = vcmask 523264   ;;  %s242_s13 = smov [#allocation7]  }
  0x29   :  { %144 = vmatpush3.bf16.msra.mxu0 %v160_v1  ;;  %v46_v5 = vpack.c.bf16 %v45_v4, %v44_v3  ;;  %v136_v6 = vld [vmem:[%s310_s2] ss:$0 sm:$0xff]  ;;  %s123_s14 = sshll.u32 %s242_s13, 4  ;;  %s124_s14 = int_to_ptr.vmem [resolvable:$true] %s123_s14 }
  0x2a   :  { %145 = vmatprep.subr.bf16.mxu0 %v240_v0  ;;  %s206_s15 = scalar_lea.vmem %s124_s14, 256  ;;  %p211_p3 = scmp.lt.s32.totalorder %s124_s14, %s124_s14 }
  0x2b   :  { %p207_p2 = scmp.ne.s32.totalorder %s124_s14, %s206_s15  ;;  %p212_p4 = scmp.lt.s32.totalorder %s206_s15, %s206_s15 }
  0x2d   :  { %146 = vmatpush3.bf16.msra.mxu0 %v161_v2  ;;  %p213_p5 = por %p212_p4, %p211_p3 }
  0x2f   :  { %p214_p6 = pnand %p213_p5, %p207_p2 }
  0x30   :  { %148 = vmatmul.mubr.msk.bf16.vlgmr.msra.gmra.mrb[0].mxu0 %vm70_vm1, %v46_v5 }
 0x103   :  { %v108_v7 = vpop.f32.mrb[0].mxu0 }
 0x104   :  { %v109_v8 = vadd.f32 %v136_v6, %v108_v7  ;;  %v149_v9 = vpop.f32.mrb[1].mxu0 }
 0x105   :  { %v111_v10 = vpop.f32.mrb[2].mxu0 }
 0x106   :  { %v112_v11 = vadd.f32 %v136_v6, %v111_v10  ;;  %v150_v12 = vpop.f32.mrb[3].mxu0  ;;  %116 = vst.msk [vmem:[#allocation7] sm:$0xff] %vm115_vm2, %v109_v8 }
 0x108   :  { %117 = vst.msk [vmem:[#allocation7 + $0x8] sm:$0xff] %vm115_vm2, %v112_v11 }
 0x109   :  { %217 = shalt.err (!%p214_p6)
}
 0x10a   :  { %s218_s17 = scalar_lea.hbm %s311_s3, 256 }
 0x10b   :  { %p219_p7 = scmp.ne.s32.totalorder %s311_s3, %s218_s17  ;;  %p222_p8 = scmp.lt.u32.totalorder %s218_s17, %s311_s3 }
 0x10d   :  { %p224_p9 = pnand %p222_p8, %p219_p7 }
 0x10f   :  { %227 = shalt.err (!%p224_p9)
}
 0x110   :  { %129 = dma.vmem_to_hbm [thread:$0]  %s124_s14, 256, %s311_s3, [#allocation4], %s235_s22, %s235_s22, %s236_s23  }
 0x111   :  { %232 = dma.done.wait [#allocation4], 256  }
 0x112   :  { %233 = vsyncadd [#allocation4], 4294967040 }
 0x113   :  { %133 = vsyncpa [#allocation3], 1 }
 0x114   :  { %134 = vsyncpa [#allocation6], 1 }
 0x115   :  { %135 = vsyncpa [#allocation4], 1 }

</bundles_post_ra>
